<compile_context>
chip_gen: v6e
topology: v6e:2x2x1
jax: 0.10.0
libtpu: 0.0.40
codegen_flags: <defaults>
</compile_context>

<pallas_src>
import functools

import jax
import jax.numpy as jnp
from jax.experimental import pallas as pl
from jax.experimental.pallas import tpu as pltpu


def _round_up(x: int, m: int) -> int:
    return ((x + m - 1) // m) * m


# ---------------------------------------------------------------------------
# Kernels
# ---------------------------------------------------------------------------

def _ann_kernel_single(x_ref, w0_ref, b0_ref, o_ref):
    """n_ANNlayers == 1 path: out = fc0(x).  bf16 operands, f32 accumulation."""
    h = jnp.dot(x_ref[...], w0_ref[...], preferred_element_type=jnp.float32)
    o_ref[...] = (h + b0_ref[...]).astype(o_ref.dtype)


def _ann_kernel_multi(x_ref, w0_ref, b0_ref, w_ref, b_ref, o_ref, h_ref, *,
                      n_layers):
    """n_ANNlayers > 1: fc0, then (n_layers-1) x [fc(relu(.))] (dropout = id)."""
    # fc0; keep the inter-layer activation in a VMEM scratch (f32).
    h_ref[...] = (
        jnp.dot(x_ref[...], w0_ref[...], preferred_element_type=jnp.float32)
        + b0_ref[...])
    # Hoist loop-invariant loads: JAX does not CSE repeated ref loads or the
    # implicit bias broadcast inside the unrolled Python loop.
    w = w_ref[...]      # bf16, (reduced, reduced)
    b = b_ref[...]      # f32,  (1, reduced)
    for _ in range(n_layers - 1):
        # ReLU in f32 on the VPU; only the MXU operand is cast to bf16.
        a = jnp.maximum(h_ref[...], 0.0).astype(w.dtype)
        h_ref[...] = jnp.dot(a, w, preferred_element_type=jnp.float32) + b
    o_ref[...] = h_ref[...].astype(o_ref.dtype)


# ---------------------------------------------------------------------------
# Wrapper
# ---------------------------------------------------------------------------

def _choose_block_m(batch: int, desired: int) -> int:
    # Big M tiles keep the MXU fed and amortize per-grid-step overhead, but
    # leave >= 2 grid steps when the batch allows it (v7x: 2 TensorCores share
    # the "parallel" grid axis).  Multiple of 16 so bf16 operand tiles respect
    # the packed (16, 128) min tile.
    desired = max(16, (desired // 16) * 16)
    half = _round_up(max(1, (batch + 1) // 2), 16)
    return max(16, min(desired, half))


def _vmem_limit_bytes(bm, input_size, reduced_size, n_layers):
    bf16, f32 = 2, 4
    x_tile = bm * input_size * bf16
    out_tile = bm * reduced_size * f32
    w0 = input_size * reduced_size * bf16 + reduced_size * f32
    w = (reduced_size * reduced_size * bf16 + reduced_size * f32) if n_layers > 1 else 0
    scratch = bm * reduced_size * f32 if n_layers > 1 else 0
    # Every BlockSpec operand is double-buffered by the Pallas pipeline.
    need = 2 * (x_tile + out_tile + w0 + w) + scratch
    # Never go below the default scoped limit; clamp to 64 MiB (v7x physical).
    return int(min(max(2 * need, 32 * 2**20), 64 * 2**20))


def ann_forward(x, w0_t, b0, w_t=None, b=None, *, n_ANNlayers=1, block_m=256):
    """ANN forward (eval mode).

    x:    (B, input_size) float32 (cast to bf16 for the MXU internally)
    w0_t: (input_size, reduced_size)  pre-transposed fc0 weight
    b0:   (reduced_size,)
    w_t:  (reduced_size, reduced_size) pre-transposed fc weight (n_ANNlayers > 1)
    b:    (reduced_size,)                                       (n_ANNlayers > 1)
    """
    B, input_size = x.shape
    reduced_size = w0_t.shape[1]

    bm = _choose_block_m(B, block_m)
    B_pad = _round_up(B, bm)
    if B_pad != B:
        x = jnp.pad(x, ((0, B_pad - B), (0, 0)))
    grid = (B_pad // bm,)

    # bf16 MXU operands; f32 biases / accumulation / output.
    x_bf = x.astype(jnp.bfloat16)
    w0_bf = w0_t.astype(jnp.bfloat16)
    b0_2d = b0.reshape(1, reduced_size).astype(jnp.float32)

    compiler_params = pltpu.CompilerParams(
        dimension_semantics=("parallel",),
        vmem_limit_bytes=_vmem_limit_bytes(bm, input_size, reduced_size,
                                           n_ANNlayers),
    )

    x_spec = pl.BlockSpec((bm, input_size), lambda i: (i, 0))
    w0_spec = pl.BlockSpec((input_size, reduced_size), lambda i: (0, 0))
    bias_spec = pl.BlockSpec((1, reduced_size), lambda i: (0, 0))
    out_spec = pl.BlockSpec((bm, reduced_size), lambda i: (i, 0))
    out_shape = jax.ShapeDtypeStruct((B_pad, reduced_size), jnp.float32)

    if n_ANNlayers <= 1:
        # Specialized path: fc weight/bias are dead -> do not pass / DMA them.
        out = pl.pallas_call(
            _ann_kernel_single,
            out_shape=out_shape,
            grid_spec=pltpu.PrefetchScalarGridSpec(
                num_scalar_prefetch=0,
                grid=grid,
                in_specs=[x_spec, w0_spec, bias_spec],
                out_specs=out_spec,
            ),
            compiler_params=compiler_params,
        )(x_bf, w0_bf, b0_2d)
    else:
        assert w_t is not None and b is not None, "fc weights needed for n_ANNlayers > 1"
        w_bf = w_t.astype(jnp.bfloat16)
        b_2d = b.reshape(1, reduced_size).astype(jnp.float32)
        kernel = functools.partial(_ann_kernel_multi, n_layers=n_ANNlayers)
        out = pl.pallas_call(
            kernel,
            out_shape=out_shape,
            grid_spec=pltpu.PrefetchScalarGridSpec(
                num_scalar_prefetch=0,
                grid=grid,
                in_specs=[
                    x_spec,
                    w0_spec,
                    bias_spec,
                    pl.BlockSpec((reduced_size, reduced_size), lambda i: (0, 0)),
                    bias_spec,
                ],
                out_specs=out_spec,
                scratch_shapes=[pltpu.VMEM((bm, reduced_size), jnp.float32)],
            ),
            compiler_params=compiler_params,
        )(x_bf, w0_bf, b0_2d, w_bf, b_2d)

    if B_pad != B:
        out = out[:B]
    return out


# ---------------------------------------------------------------------------
# References / test harness
# ---------------------------------------------------------------------------

def _init_linear(key, in_features, out_features):
    """PyTorch-style Linear init: U(-1/sqrt(fan_in), 1/sqrt(fan_in)); weight transposed."""
    kw, kb = jax.random.split(key)
    bound = 1.0 / jnp.sqrt(jnp.float32(in_features))
    w_t = jax.random.uniform(kw, (in_features, out_features), jnp.float32,
                             minval=-bound, maxval=bound)
    bias = jax.random.uniform(kb, (out_features,), jnp.float32,
                              minval=-bound, maxval=bound)
    return w_t, bias


def _reference_bf16(x, w0_t, b0, w_t, b, n_ANNlayers):
    # Mirrors the kernel's bf16-operand / f32-accumulate recipe.
    h = jnp.dot(x.astype(jnp.bfloat16), w0_t.astype(jnp.bfloat16),
                preferred_element_type=jnp.float32) + b0
    for _ in range(n_ANNlayers - 1):
        a = jnp.maximum(h, 0.0).astype(jnp.bfloat16)
        h = jnp.dot(a, w_t.astype(jnp.bfloat16),
                    preferred_element_type=jnp.float32) + b
    return h


def _reference_f32(x, w0_t, b0, w_t, b, n_ANNlayers):
    h = x @ w0_t + b0
    for _ in range(n_ANNlayers - 1):
        h = jnp.maximum(h, 0.0) @ w_t + b
    return h


if __name__ == "__main__":
    # Small shapes consistent with the module (scaled-down input_size).
    input_size = 256
    reduced_size = 128

    key = jax.random.PRNGKey(0)
    kx, k0, k1 = jax.random.split(key, 3)

    w0_t, b0 = _init_linear(k0, input_size, reduced_size)
    w_t, b = _init_linear(k1, reduced_size, reduced_size)

    # --- test 1: module default n_ANNlayers=1 (specialized single-layer path) ---
    batch = 32
    x = jax.random.normal(kx, (batch, input_size), jnp.float32)
    out1 = jax.block_until_ready(ann_forward(x, w0_t, b0, n_ANNlayers=1))
    assert out1.shape == (batch, reduced_size)
    ref1_bf = _reference_bf16(x, w0_t, b0, w_t, b, 1)
    ref1_f32 = _reference_f32(x, w0_t, b0, w_t, b, 1)
    assert jnp.allclose(out1, ref1_bf, atol=1e-2, rtol=1e-2), "mismatch (n=1, bf16 ref)"
    assert jnp.allclose(out1, ref1_f32, atol=5e-2, rtol=5e-2), "mismatch (n=1, f32 ref)"

    # --- test 2: multi-layer path (relu + fc, VMEM activation scratch) ---
    out2 = jax.block_until_ready(
        ann_forward(x, w0_t, b0, w_t, b, n_ANNlayers=3))
    ref2_bf = _reference_bf16(x, w0_t, b0, w_t, b, 3)
    ref2_f32 = _reference_f32(x, w0_t, b0, w_t, b, 3)
    assert out2.shape == (batch, reduced_size)
    assert jnp.allclose(out2, ref2_bf, atol=1e-2, rtol=1e-2), "mismatch (n=3, bf16 ref)"
    assert jnp.allclose(out2, ref2_f32, atol=5e-2, rtol=5e-2), "mismatch (n=3, f32 ref)"

    # --- test 3: ragged batch (exercises the padding / remainder handling) ---
    batch3 = 20
    x3 = jax.random.normal(kx, (batch3, input_size), jnp.float32)
    out3 = jax.block_until_ready(
        ann_forward(x3, w0_t, b0, w_t, b, n_ANNlayers=2))
    ref3_bf = _reference_bf16(x3, w0_t, b0, w_t, b, 2)
    assert out3.shape == (batch3, reduced_size)
    assert jnp.allclose(out3, ref3_bf, atol=1e-2, rtol=1e-2), "mismatch (ragged batch)"

    print("KERNEL_OK")
</pallas_src>

<mosaic_0001>
module attributes {stable_mosaic.version = 11 : i64} {
  func.func @_ann_kernel_single(%arg0: i32, %arg1: memref<16x256xbf16, #tpu.memory_space<vmem>>, %arg2: memref<256x128xbf16, #tpu.memory_space<vmem>>, %arg3: memref<1x128xf32, #tpu.memory_space<vmem>>, %arg4: memref<16x128xf32, #tpu.memory_space<vmem>>) attributes {dimension_semantics = [#tpu.dimension_semantics<parallel>], iteration_bounds = array<i64: 2>, scalar_prefetch = 0 : i64, scratch_operands = 0 : i64, tpu.core_type = #tpu.core_type<tc>, window_params = [{transform_indices = @transform_0, window_bounds = array<i64: 16, 256>}, {pipeline_mode = #tpu.pipeline_mode<synchronous>, transform_indices = @transform_1, window_bounds = array<i64: 256, 128>}, {pipeline_mode = #tpu.pipeline_mode<synchronous>, transform_indices = @transform_2, window_bounds = array<i64: 1, 128>}, {transform_indices = @transform_3, window_bounds = array<i64: 16, 128>}]} {
    %c0 = arith.constant 0 : index
    %c0_0 = arith.constant 0 : index
    %0 = vector.load %arg1[%c0, %c0_0] : memref<16x256xbf16, #tpu.memory_space<vmem>>, vector<16x256xbf16>
    %c0_1 = arith.constant 0 : index
    %c0_2 = arith.constant 0 : index
    %1 = vector.load %arg2[%c0_1, %c0_2] : memref<256x128xbf16, #tpu.memory_space<vmem>>, vector<256x128xbf16>
    %cst = arith.constant dense<0.000000e+00> : vector<16x128xf32>
    %2 = tpu.matmul %0, %1, %cst {dimension_numbers = #tpu.dot_dimension_numbers<[1], [0], [0], [1], [0, 0, 1, 1], [], []>} : vector<16x256xbf16>, vector<256x128xbf16>, vector<16x128xf32> -> vector<16x128xf32>
    %c0_3 = arith.constant 0 : index
    %c0_4 = arith.constant 0 : index
    %3 = vector.load %arg3[%c0_3, %c0_4] : memref<1x128xf32, #tpu.memory_space<vmem>>, vector<1x128xf32>
    %4 = vector.broadcast %3 : vector<1x128xf32> to vector<16x128xf32>
    %5 = arith.addf %2, %4 : vector<16x128xf32>
    %c0_5 = arith.constant 0 : index
    %c0_6 = arith.constant 0 : index
    %6 = vector.load %arg4[%c0_5, %c0_6] : memref<16x128xf32, #tpu.memory_space<vmem>>, vector<16x128xf32>
    tpu.vector_store %arg4[%c0_5, %c0_6], %5 {strides = array<i32>} : memref<16x128xf32, #tpu.memory_space<vmem>>, vector<16x128xf32>,
    return
  }
  func.func @transform_0(%arg0: i32) -> (i32, i32) {
    %c0_i32 = arith.constant 0 : i32
    %c0_i32_0 = arith.constant 0 : i32
    return %arg0, %c0_i32 : i32, i32
  }
  func.func @transform_1(%arg0: i32) -> (i32, i32) {
    %c0_i32 = arith.constant 0 : i32
    %c0_i32_0 = arith.constant 0 : i32
    %c0_i32_1 = arith.constant 0 : i32
    return %c0_i32, %c0_i32_0 : i32, i32
  }
  func.func @transform_2(%arg0: i32) -> (i32, i32) {
    %c0_i32 = arith.constant 0 : i32
    %c0_i32_0 = arith.constant 0 : i32
    %c0_i32_1 = arith.constant 0 : i32
    return %c0_i32, %c0_i32_0 : i32, i32
  }
  func.func @transform_3(%arg0: i32) -> (i32, i32) {
    %c0_i32 = arith.constant 0 : i32
    %c0_i32_0 = arith.constant 0 : i32
    return %arg0, %c0_i32 : i32, i32
  }
}

</mosaic_0001>

<bundles_post_ra>
// kernel: tpu_custom_call.1
= control target key start
LH: loop header
LB: loop body
LE: loop exit
PB: predicated region body
PF: predicated region fallthrough
CT: control target
= control target key end

     0   :  { %8 = vsyncpa [#allocation3], 0  ;;  %s979_s0 = inlined_call_operand.hbm [shape: bf16[32,256], index: 0, kind: input, shape index: {}]   ;;  %s980_s1 = inlined_call_operand.hbm [shape: bf16[256,128], index: 1, kind: input, shape index: {}]   ;;  %s981_s2 = inlined_call_operand.vmem [shape: f32[1,128], index: 2, kind: input, shape index: {}]   ;;  %s982_s3 = inlined_call_operand.hbm [shape: f32[32,128], index: 3, kind: output, shape index: {}]  }
   0x1   :  { %10 = vsyncpa [#allocation3 + $0x1], 0 }
   0x2   :  { %11 = vsyncpa [#allocation6], 0 }
   0x3   :  { %12 = vsyncpa [#allocation4], 0 }
   0x4   :  { %14 = vsyncpa [#allocation4 + $0x1], 0  ;;  %s791_s12 = smov 0   ;;  %s793_s13 = smov 0  }
   0x5   :  { %s795_s14 = smov 0   ;;  %s797_s15 = smov 0  }
   0x6 LB: > { %s812_s16 = sadd.s32 4294967295, %s760_s15   ;;  %s495_s17 = sadd.s32 4294967294, %s760_s15   ;;  %s760_s15 = sphi %s797_s15, %s1004_s15   ;;  %s756_s14 = sphi %s795_s14, %s1003_s14   ;;  %s752_s13 = sphi %s793_s13, %s1002_s13   ;;  %s748_s12 = sphi %s791_s12, %s1001_s12  }
   0x7   : > { %p40_p0 = scmp.ne.s32.totalorder %s752_s13, %s748_s12  ;;  %p983_p1 = scmp.eq.s32.totalorder %s812_s16, 0 }
   0x8   : > { %p112_p3 = scmp.eq.s32.totalorder %s495_s17, 1  ;;  %p496_p5 = scmp.ge.s32.totalorder %s760_s15, 1 }
   0x9   : > { %p821_p4 = por %p983_p1, %p40_p0  ;;  %p119_p7 = scmp.lt.s32.totalorder %s760_s15, 3 }
   0xa   : > { %p826_p6 = por %p112_p3, %p40_p0  ;;  %s762_s21 = smov [#allocation5]  }
   0xb   : > { %s987_s18 = scalar_select %p821_p4, 1, 0 }
   0xc   : > { %s988_s19 = scalar_select %p826_p6, 1, 0 }
   0xd   : > { %p831_p8 = pnand %p496_p5, %p119_p7  ;;  %s131_s22 = sshll.u32 %s762_s21, 4  ;;  %s132_s22 = int_to_ptr.vmem [resolvable:$true] %s131_s22 }
   0xe   : > { %s845_s24 = sadd.s32 1, %s760_s15   ;;  %s27_s25 = sadd.s32 1, %s756_s14 }
   0xf   : > { %s989_s20 = scalar_select %p831_p8, 1, 0 }
  0x10   : > { %p564_p9 = pneg %p831_p8  ;;  %s24_s26 = ssub.s32 %s760_s15, %s845_s24 }
  0x11   : > { %s649_s27 = scalar_lea.vmem %s132_s22, 2048  ;;  %p657_p5 = scmp.lt.s32.totalorder %s132_s22, %s132_s22 }
  0x12   : > { %p840_p11 = pnand %p564_p9, %p983_p1  ;;  %p650_p13 = scmp.ne.s32.totalorder %s132_s22, %s649_s27 }
  0x13   : > { %p658_p7 = scmp.lt.s32.totalorder %s649_s27, %s649_s27 }
  0x14   : > { %p640_p12 = pneg %p840_p11 }
  0x15   : > { %p659_p10 = por %p658_p7, %p657_p5 }
  0x16   : > { %p652_p0 = pnand %p650_p13, %p640_p12 }
  0x18   : > { %p653_p3 = pneg %p652_p0 }
  0x1a   : > { %p660_p2 = pnand %p659_p10, %p653_p3 }
  0x1c   : > { %663 = shalt.err (!%p660_p2)
}
  0x1d   : > { %s763_s28 = smov 64   ;;  %s764_s29 = smov 4  }
  0x1e   : > { %567 = dma.hbm_to_vmem [thread:$0]  (!%p840_p11), %s980_s1, 2048, %s132_s22, [#allocation6], %s763_s28, %s763_s28, %s764_s29  }
  0x1f   : > { %p25_p9 = scmp.eq.s32.totalorder %s24_s26, 0  ;;  %p34_p12 = scmp.ne.s32.totalorder %s756_s14, %s752_s13 }
  0x20   : > { %p35_p10 = scmp.eq.s32.totalorder %s760_s15, 0  ;;  %p577_p2 = scmp.lt.s32.totalorder %s760_s15, 2 }
  0x21   : > { %s862_s5 = scalar_select %p25_p9, %s756_s14, %s27_s25  }
  0x22   : > { %p36_p13 = por %p35_p10, %p34_p12  ;;  %p991_p0 = scmp.eq.s32.totalorder %s812_s16, 1 }
  0x23   : > { %s148_s7 = sand.u32 1, %s756_s14   ;;  %s532_s8 = sshll.u32 %s760_s15, 8 }
  0x24   : > { %p866_p3 = por %p991_p0, %p34_p12  ;;  %s499_s9 = sshll.u32 %s148_s7, 4 }
  0x25   : > { %s875_s17 = scalar_lea.hbm %s979_s0, %s532_s8  ;;  %s152_s21 = scalar_lea.vmem [#allocation2], %s499_s9 }
  0x26   : > { %s992_s6 = scalar_select %p866_p3, 1, 0 }
  0x27   : > { %s160_s22 = sshll.u32 %s152_s21, 4  ;;  %p877_p11 = pnand %p577_p2, %p36_p13  ;;  %s881_s22 = int_to_ptr.vmem [resolvable:$true] %s160_s22 }
  0x28   : > { %s883_s25 = scalar_lea.sflag [#allocation3], %s148_s7  ;;  %s664_s26 = scalar_lea.hbm %s875_s17, 256 }
  0x29   : > { %p665_p5 = scmp.ne.s32.totalorder %s875_s17, %s664_s26  ;;  %p666_p7 = pneg %p877_p11 }
  0x2a   : > { %s669_s29 = scalar_lea.hbm %s979_s0, 512  ;;  %p670_p10 = scmp.lt.s32.totalorder %s875_s17, %s979_s0 }
  0x2b   : > { %p667_p9 = pnand %p666_p7, %p665_p5  ;;  %p671_p2 = scmp.lt.s32.totalorder %s669_s29, %s664_s26 }
  0x2d   : > { %p668_p12 = pneg %p667_p9  ;;  %p672_p13 = por %p671_p2, %p670_p10 }
  0x2f   : > { %p673_p0 = pnand %p672_p13, %p668_p12 }
  0x31   : > { %676 = shalt.err (!%p673_p0)
}
  0x32   : > { %s677_s7 = scalar_lea.vmem %s881_s22, 256  ;;  %s765_s8 = smov [#allocation2]  }
  0x33   : > { %p678_p1 = scmp.ne.s32.totalorder %s881_s22, %s677_s7  ;;  %s682_s9 = sshll.u32 %s765_s8, 4  ;;  %s683_s9 = int_to_ptr.vmem [resolvable:$false] %s682_s9 }
  0x34   : > { %s684_s10 = scalar_lea.vmem %s683_s9, 512  ;;  %p685_p9 = scmp.lt.s32.totalorder %s881_s22, %s683_s9 }
  0x35   : > { %p680_p6 = pnand %p678_p1, %p666_p7  ;;  %p686_p3 = scmp.lt.s32.totalorder %s684_s10, %s677_s7 }
  0x37   : > { %p681_p5 = pneg %p680_p6  ;;  %p687_p4 = por %p686_p3, %p685_p9 }
  0x39   : > { %p688_p8 = pnand %p687_p4, %p681_p5 }
  0x3b   : > { %691 = shalt.err (!%p688_p8)
}
  0x3c   : > { %s766_s11 = smov 128   ;;  %s767_s21 = smov 8  }
  0x3d   : > { %571 = dma.hbm_to_vmem [thread:$0]  (!%p877_p11), %s875_s17, 256, %s881_s22, %s883_s25, %s766_s11, %s766_s11, %s767_s21  }
  0x3e   : > { %p994_p1 = scmp.ne.s32.totalorder %s989_s20, 0 }
  0x3f   : > { %s907_s26 = sand.u32 (!%p994_p1), 1, %s752_s13   ;;  %p995_p4 = scmp.ne.s32.totalorder (!%p994_p1), %s987_s18, 0 }
  0x40   : > { %172 = sbr.rel (%p994_p1) target bundleno = 323 (0x143), region = 32  ;;  %s504_s27 = sshll.u32 (!%p994_p1), %s907_s26, 4 }
  0x41   : > { %s175_s28 = scalar_lea.sflag (!%p994_p1), [#allocation3], %s907_s26  ;;  %s913_s29 = scalar_lea.vmem (!%p994_p1), [#allocation2], %s504_s27 }
  0x45   : > { %735 = dma.done.wait (%p995_p4), %s175_s28, 256  }
  0x46   : > { %737 = vsyncadd (%p995_p4), %s175_s28, 4294967040  ;;  %p996_p6 = scmp.eq.s32.totalorder %s812_s16, 0 }
  0x48   : > { %739 = dma.done.wait (%p996_p6), [#allocation6], 2048   ;;  %p997_p8 = pmov %p996_p6 }
  0x49   : > { %v619_v0 = vld [vmem:[#allocation5 + $0x78] sm:$0xff]   ;;  %v621_v2 = vld [vmem:[#allocation5 + $0x70] sm:$0xff]   ;;  %v623_v4 = vld [vmem:[#allocation5 + $0x68] sm:$0xff]   ;;  %s204_s17 = scalar_lea.vmem [#allocation7], %s504_s27  ;;  %s533_s23 = sshll.u32 %s812_s16, 8 }
  0x4a   : > { %741 = vsyncadd (%p997_p8), [#allocation6], 4294965248  ;;  %v620_v1 = vld [vmem:[#allocation5 + $0x38] sm:$0xff]   ;;  %534 = vmatprep.subr.bf16.mxu0 %v619_v0  ;;  %v622_v3 = vld [vmem:[#allocation5 + $0x30] sm:$0xff]   ;;  %s412_s22 = sshll.u32 %s204_s17, 4  ;;  %s936_s4 = scalar_lea.hbm %s982_s3, %s533_s23  ;;  %s931_s22 = int_to_ptr.vmem [resolvable:$true] %s412_s22 }
  0x4b   : > { %535 = vmatpush3.bf16.msra.mxu0 %v620_v1  ;;  %v624_v5 = vld [vmem:[#allocation5 + $0x28] sm:$0xff]   ;;  %v625_v6 = vld [vmem:[#allocation5 + $0x60] sm:$0xff]   ;;  %v627_v8 = vld [vmem:[#allocation5 + $0x58] sm:$0xff]   ;;  %s399_s7 = scalar_lea.sflag [#allocation4], %s907_s26  ;;  %s692_s8 = scalar_lea.vmem %s931_s22, 256 }
  0x4c   : > { %536 = vmatprep.subr.bf16.mxu0 %v621_v2  ;;  %v626_v7 = vld [vmem:[#allocation5 + $0x20] sm:$0xff]   ;;  %v628_v9 = vld [vmem:[#allocation5 + $0x18] sm:$0xff]   ;;  %v629_v10 = vld [vmem:[#allocation5 + $0x50] sm:$0xff]   ;;  %p693_p3 = scmp.ne.s32.totalorder %s931_s22, %s692_s8  ;;  %p998_p11 = scmp.ne.s32.totalorder %s992_s6, 0 }
  0x4d   : > { %v637_v11 = vld [vmem:[%s913_s29 + $0x4] ss:$8 sps:$4 sm:$0xff]   ;;  %v635_v17 = vld [vmem:[%s913_s29] ss:$8 sps:$4 sm:$0xff]   ;;  %s768_s16 = smov [#allocation7]  }
  0x4e   : > { %v630_v12 = vld [vmem:[#allocation5 + $0x10] sm:$0xff]   ;;  %387 = vmatprep.mubr.bf16.mxu0 %v637_v11  ;;  %v631_v13 = vld [vmem:[#allocation5 + $0x48] sm:$0xff]   ;;  %v633_v15 = vld [vmem:[#allocation5 + $0x40] sm:$0xff]   ;;  %p694_p7 = pnand %p693_p3, %p998_p11  ;;  %s696_s9 = sshll.u32 %s768_s16, 4  ;;  %s697_s9 = int_to_ptr.vmem [resolvable:$false] %s696_s9 }
  0x4f   : > { %537 = vmatpush3.bf16.msra.mxu0 %v622_v3  ;;  %v632_v14 = vld [vmem:[#allocation5 + $0x8] sm:$0xff]   ;;  %v634_v16 = vld [vmem:[#allocation5] sm:$0xff]   ;;  %s698_s10 = scalar_lea.vmem %s697_s9, 512  ;;  %p699_p10 = scmp.lt.s32.totalorder %s931_s22, %s697_s9 }
  0x50   : > { %538 = vmatprep.subr.bf16.mxu0 %v623_v4  ;;  %v507_v19 = vld [vmem:[%s981_s2] ss:$0 sm:$0xff]  ;;  %p695_p12 = pneg %p694_p7  ;;  %p700_p2 = scmp.lt.s32.totalorder %s698_s10, %s692_s8 }
  0x52   : > { %p701_p13 = por %p700_p2, %p699_p10 }
  0x53   : > { %539 = vmatpush3.bf16.msra.mxu0 %v624_v5 }
  0x54   : > { %540 = vmatprep.subr.bf16.mxu0 %v625_v6  ;;  %p702_p0 = pnand %p701_p13, %p695_p12 }
  0x57   : > { %541 = vmatpush3.bf16.msra.mxu0 %v626_v7 }
  0x58   : > { %542 = vmatprep.subr.bf16.mxu0 %v627_v8 }
  0x5b   : > { %543 = vmatpush3.bf16.msra.mxu0 %v628_v9 }
  0x5c   : > { %544 = vmatprep.subr.bf16.mxu0 %v629_v10 }
  0x5f   : > { %545 = vmatpush3.bf16.msra.mxu0 %v630_v12 }
  0x60   : > { %546 = vmatprep.subr.bf16.mxu0 %v631_v13 }
  0x63   : > { %547 = vmatpush3.bf16.msra.mxu0 %v632_v14 }
  0x64   : > { %548 = vmatprep.subr.bf16.mxu0 %v633_v15 }
  0x67   : > { %549 = vmatpush3.bf16.msra.mxu0 %v634_v16 }
  0x6a   : > { %388 = vmatmul.mubr.bf16.vlgmr.msra.gmra.mxu0 %v635_v17 }
 0x12a   : > { %v550_v18 = vpop.f32.mrf.mxu0 }
 0x12c   : > { %v551_v20 = vpop.f32.mrf.mxu0 }
 0x12d   : > { %v552_v21 = vadd.f32 %v551_v20, %v550_v18 }
 0x12e   : > { %v553_v22 = vpop.f32.mrf.mxu0 }
 0x12f   : > { %v390_v23 = vadd.f32 %v552_v21, %v507_v19 }
 0x130   : > { %v554_v24 = vpop.f32.mrf.mxu0 }
 0x131   : > { %396 = vst [vmem:[%s204_s17] sm:$0xff] %v390_v23  ;;  %v555_v25 = vadd.f32 %v554_v24, %v553_v22 }
 0x133   : > { %v393_v26 = vadd.f32 %v555_v25, %v507_v19 }
 0x135   : > { %397 = vst [vmem:[%s204_s17 + $0x8] sm:$0xff] %v393_v26 }
 0x136   : > { %705 = shalt.err (!%p702_p0)
}
 0x137   : > { %s706_s11 = scalar_lea.hbm %s936_s4, 256  ;;  %s710_s28 = scalar_lea.hbm %s982_s3, 512 }
 0x138   : > { %p707_p5 = scmp.ne.s32.totalorder %s936_s4, %s706_s11  ;;  %p711_p4 = scmp.lt.s32.totalorder %s936_s4, %s982_s3 }
 0x139   : > { %p712_p6 = scmp.lt.s32.totalorder %s710_s28, %s706_s11 }
 0x13a   : > { %p708_p9 = pnand %p707_p5, %p998_p11 }
 0x13b   : > { %p713_p8 = por %p712_p6, %p711_p4 }
 0x13c   : > { %p709_p1 = pneg %p708_p9 }
 0x13e   : > { %p714_p3 = pnand %p713_p8, %p709_p1 }
 0x140   : > { %717 = shalt.err (!%p714_p3)
}
 0x141   : > { %s769_s20 = smov 128   ;;  %s770_s17 = smov 8  }
 0x142   : > { %562 = dma.vmem_to_hbm [thread:$0]  (%p998_p11), %s931_s22, 256, %s936_s4, %s399_s7, %s769_s20, %s769_s20, %s770_s17  }
 0x143 PF: > { %s427_s23 = sand.u32 1, %s748_s12   ;;  %p999_p7 = scmp.ne.s32.totalorder %s988_s19, 0 }
 0x144   : > { %p1000_p12 = scmp.ge.s32.totalorder %s760_s15, 2  ;;  %s428_s25 = scalar_lea.sflag [#allocation4], %s427_s23 }
 0x146   : > { %p573_p10 = pnand %p1000_p12, %p999_p7 }
 0x148   : > { %p574_p2 = pneg %p573_p10 }
 0x14a   : > { %743 = dma.done.wait (%p574_p2), %s428_s25, 256  }
 0x14b   : > { %745 = vsyncadd (%p574_p2), %s428_s25, 4294967040  ;;  %p17_p13 = scmp.ge.s32.totalorder %s845_s24, 4   ;;  %s1001_s12 = smov %s752_s13 }
 0x14c   : > { %s1002_s13 = smov %s756_s14  ;;  %s1003_s14 = smov %s862_s5 }
 0x14d   : > { %s1004_s15 = smov %s845_s24  ;;  %19 = sbr.rel (!%p17_p13) target bundleno = 6 (0x6), region = 81 }
 0x152   :  { %433 = vsyncpa [#allocation3], 1 }
 0x153   :  { %435 = vsyncpa [#allocation3 + $0x1], 1 }
 0x154   :  { %436 = vsyncpa [#allocation6], 1 }
 0x155   :  { %437 = vsyncpa [#allocation4], 1 }
 0x156   :  { %439 = vsyncpa [#allocation4 + $0x1], 1 }

</bundles_post_ra>
